<compile_context>
chip_gen: v7x
topology: tpu7x:2x2x1
jax: 0.10.0
libtpu: 0.0.40
codegen_flags: <defaults>
</compile_context>

<pallas_src>
import jax
import jax.numpy as jnp
from jax.experimental import pallas as pl
from jax.experimental.pallas import tpu as pltpu


def _multispike_att_kernel(x_ref, o_ref):
    # Compute in f32 regardless of input dtype so quantization boundaries match
    # the f32 reference exactly; cast back on store.
    x = x_ref[...].astype(jnp.float32)
    y = jnp.clip(4.0 * x, 0.0, 4.0)
    o_ref[...] = (jnp.floor(y + 0.5) * 0.5).astype(o_ref.dtype)


def _multispike_att_fused(x: jax.Array) -> jax.Array:
    """Pure-jnp fallback (XLA fuses this short elementwise chain)."""
    xf = x.astype(jnp.float32)
    y = jnp.floor(jnp.clip(4.0 * xf, 0.0, 4.0) + 0.5) * 0.5
    return y.astype(x.dtype)


_LANE = 128
_TILE_BYTES = 4 * 1024 * 1024      # ~4 MiB input tile; in+out double-buffered = 16 MiB
_MIN_GRID_BLOCKS = 4               # aim for >= 4 grid steps so DMA read/writeback overlap
_WIDTH_CANDIDATES = (4096, 2048, 1024, 512, 256, 128)


def _cdiv(a: int, b: int) -> int:
    return -(-a // b)


def _round_up(a: int, m: int) -> int:
    return _cdiv(a, m) * m


def _pick_width(n_main: int) -> int:
    """Widest lane-dense slab width (multiple of 128) dividing n_main, preferring
    a width that still leaves enough rows (>= 8 * _MIN_GRID_BLOCKS) to split the grid."""
    for w in _WIDTH_CANDIDATES:
        if n_main % w == 0 and (n_main // w) >= 8 * _MIN_GRID_BLOCKS:
            return w
    for w in _WIDTH_CANDIDATES:
        if n_main % w == 0:
            return w
    return _LANE  # unreachable: n_main is a multiple of 128


def _multispike_att_pallas_2d(x2d: jax.Array, tile_rows: int) -> jax.Array:
    rows, width = x2d.shape
    grid = (_cdiv(rows, tile_rows),)
    return pl.pallas_call(
        _multispike_att_kernel,
        out_shape=jax.ShapeDtypeStruct((rows, width), x2d.dtype),
        grid=grid,
        in_specs=[pl.BlockSpec((tile_rows, width), lambda i: (i, 0))],
        out_specs=pl.BlockSpec((tile_rows, width), lambda i: (i, 0)),
        compiler_params=pltpu.CompilerParams(
            # "parallel" lets the row axis shard across TCs on multi-TC parts.
            # (If xprof on v7x shows only one TC active, switch this axis to
            #  pltpu.CORE_PARALLEL.)
            dimension_semantics=("parallel",),
            vmem_limit_bytes=32 * 1024 * 1024,  # 16 MiB used; safe on v5e/v6e/v7x
        ),
    )(x2d)


def multispike_att_forward(x: jax.Array, *, min_pallas_elems: int = 1 << 15) -> jax.Array:
    """Elementwise Multispike_att forward for any shape / floating dtype."""
    orig_shape = x.shape
    orig_dtype = x.dtype
    n = x.size

    if n == 0:
        return x
    if n < min_pallas_elems:
        # Tiny tensors: pallas_call dispatch + reshapes cost more than the work.
        return _multispike_att_fused(x)

    flat = x.reshape(-1)

    # Lane-aligned prefix through Pallas; tiny (<128 elem) tail through fused jnp.
    tail = n % _LANE
    n_main = n - tail
    if n_main == 0:
        return _multispike_att_fused(x)

    main = flat[:n_main] if tail else flat

    width = _pick_width(n_main)
    rows = n_main // width
    x2d = main.reshape(rows, width)

    dtype_bytes = jnp.dtype(orig_dtype).itemsize

    if rows < 8:
        # Block shape must equal the full dim when not a multiple of 8.
        tile_rows = rows
    else:
        # Byte-budgeted tile, but split into >= _MIN_GRID_BLOCKS blocks when possible
        # so input DMA / compute / writeback pipeline across grid steps.
        tile_budget = max(8, (_TILE_BYTES // (width * dtype_bytes)) // 8 * 8)
        tile_split = max(8, _round_up(_cdiv(rows, _MIN_GRID_BLOCKS), 8))
        rows_floor8 = (rows // 8) * 8
        tile_rows = min(tile_budget, tile_split, rows_floor8)

    out_main = _multispike_att_pallas_2d(x2d, tile_rows).reshape(-1)

    if tail:
        out_tail = _multispike_att_fused(flat[n_main:])
        out_flat = jnp.concatenate([out_main, out_tail])
    else:
        out_flat = out_main
    return out_flat.reshape(orig_shape)


def multispike_att_reference(x: jax.Array) -> jax.Array:
    xf = x.astype(jnp.float32)
    return (jnp.floor(jnp.clip(4.0 * xf, 0.0, 4.0) + 0.5) / 2.0).astype(x.dtype)


if __name__ == "__main__":
    key = jax.random.PRNGKey(0)
    k1, k2, k3, k4 = jax.random.split(key, 4)

    # Primary small example consistent with the module (NCHW activation).
    x_small = jax.random.normal(k1, (2, 4, 16, 16), dtype=jnp.float32) * 1.5
    # Force the Pallas path so the kernel itself is exercised on this input.
    out_small = jax.block_until_ready(
        multispike_att_forward(x_small, min_pallas_elems=0))
    ref_small = multispike_att_reference(x_small)
    assert out_small.shape == x_small.shape
    assert out_small.dtype == x_small.dtype
    assert jnp.array_equal(out_small, ref_small), "small-input mismatch vs reference"

    # Larger lane-aligned activation: exercises the multi-block Pallas path (default threshold).
    x_big = jax.random.normal(k2, (2, 8, 64, 128), dtype=jnp.float32) * 2.0
    out_big = jax.block_until_ready(multispike_att_forward(x_big))
    assert jnp.array_equal(out_big, multispike_att_reference(x_big)), "big-input mismatch"

    # Unaligned total size: exercises the aligned-prefix + fused-tail branch.
    x_rag = jax.random.normal(k3, (3, 5, 7, 11), dtype=jnp.float32)
    out_rag = jax.block_until_ready(
        multispike_att_forward(x_rag, min_pallas_elems=0))
    assert jnp.array_equal(out_rag, multispike_att_reference(x_rag)), "ragged-input mismatch"

    # bf16 input: f32 compute / cast-on-store path.
    x_bf16 = (jax.random.normal(k4, (4, 8, 32, 128), dtype=jnp.float32) * 2.0).astype(jnp.bfloat16)
    out_bf16 = jax.block_until_ready(
        multispike_att_forward(x_bf16, min_pallas_elems=0))
    assert out_bf16.dtype == jnp.bfloat16
    assert jnp.array_equal(out_bf16, multispike_att_reference(x_bf16)), "bf16-input mismatch"

    print("KERNEL_OK")
</pallas_src>

<mosaic_0001>
module attributes {stable_mosaic.version = 11 : i64} {
  func.func @_multispike_att_kernel(%arg0: i32, %arg1: memref<1x2048xf32, #tpu.memory_space<vmem>>, %arg2: memref<1x2048xf32, #tpu.memory_space<vmem>>) attributes {dimension_semantics = [#tpu.dimension_semantics<parallel>], iteration_bounds = array<i64: 1>, scalar_prefetch = 0 : i64, scratch_operands = 0 : i64, tpu.core_type = #tpu.core_type<tc>, window_params = [{transform_indices = @transform_0, window_bounds = array<i64: 1, 2048>}, {transform_indices = @transform_1, window_bounds = array<i64: 1, 2048>}]} {
    %c0 = arith.constant 0 : index
    %c0_0 = arith.constant 0 : index
    %0 = vector.load %arg1[%c0, %c0_0] : memref<1x2048xf32, #tpu.memory_space<vmem>>, vector<1x2048xf32>
    %cst = arith.constant 4.000000e+00 : f32
    %1 = vector.broadcast %cst : f32 to vector<1x2048xf32>
    %2 = arith.mulf %1, %0 : vector<1x2048xf32>
    %cst_1 = arith.constant 0.000000e+00 : f32
    %cst_2 = arith.constant 4.000000e+00 : f32
    %3 = vector.broadcast %cst_1 : f32 to vector<1x2048xf32>
    %4 = arith.maximumf %3, %2 : vector<1x2048xf32>
    %5 = vector.broadcast %cst_2 : f32 to vector<1x2048xf32>
    %6 = arith.minimumf %5, %4 : vector<1x2048xf32>
    %cst_3 = arith.constant 5.000000e-01 : f32
    %7 = vector.broadcast %cst_3 : f32 to vector<1x2048xf32>
    %8 = arith.addf %6, %7 : vector<1x2048xf32>
    %9 = math.floor %8 : vector<1x2048xf32>
    %cst_4 = arith.constant 5.000000e-01 : f32
    %10 = vector.broadcast %cst_4 : f32 to vector<1x2048xf32>
    %11 = arith.mulf %9, %10 : vector<1x2048xf32>
    %c0_5 = arith.constant 0 : index
    %c0_6 = arith.constant 0 : index
    %12 = vector.load %arg2[%c0_5, %c0_6] : memref<1x2048xf32, #tpu.memory_space<vmem>>, vector<1x2048xf32>
    tpu.vector_store %arg2[%c0_5, %c0_6], %11 {strides = array<i32>} : memref<1x2048xf32, #tpu.memory_space<vmem>>, vector<1x2048xf32>,
    return
  }
  func.func @transform_0(%arg0: i32) -> (i32, i32) {
    %c0_i32 = arith.constant 0 : i32
    %c0_i32_0 = arith.constant 0 : i32
    return %arg0, %c0_i32 : i32, i32
  }
  func.func @transform_1(%arg0: i32) -> (i32, i32) {
    %c0_i32 = arith.constant 0 : i32
    %c0_i32_0 = arith.constant 0 : i32
    return %arg0, %c0_i32 : i32, i32
  }
}

</mosaic_0001>

<bundles_post_ra>
// kernel: tpu_custom_call.1
= control target key start
LH: loop header
LB: loop body
LE: loop exit
PB: predicated region body
PF: predicated region fallthrough
CT: control target
= control target key end

     0   :  { %6 = vsyncpa [#allocation3], 0  ;;  %s138_s0 = inlined_call_operand.hbm [shape: f32[1,2048], index: 0, kind: input, shape index: {}]   ;;  %s139_s1 = inlined_call_operand.hbm [shape: f32[1,2048], index: 1, kind: output, shape index: {}]  }
   0x1   :  { %7 = vsyncpa [#allocation4], 0  ;;  %s102_s6 = smov [#allocation2]   ;;  %s54_s10 = scalar_lea.hbm %s138_s0, 256 }
   0x2   :  { %s14_s7 = sshll.u32 %s102_s6, 4  ;;  %p55_p0 = scmp.ne.s32.totalorder %s138_s0, %s54_s10  ;;  %s15_s7 = int_to_ptr.vmem [resolvable:$true] %s14_s7 }
   0x3   :  { %p58_p1 = scmp.lt.u32.totalorder %s54_s10, %s138_s0 }
   0x5   :  { %p60_p2 = pnand %p58_p1, %p55_p0 }
   0x7   :  { %63 = shalt.err (!%p60_p2)
}
   0x8   :  { %s64_s15 = scalar_lea.vmem %s15_s7, 256  ;;  %p69_p4 = scmp.lt.s32.totalorder %s15_s7, %s15_s7 }
   0x9   :  { %p65_p3 = scmp.ne.s32.totalorder %s15_s7, %s64_s15  ;;  %p70_p5 = scmp.lt.s32.totalorder %s64_s15, %s64_s15 }
   0xb   :  { %p71_p6 = por %p70_p5, %p69_p4 }
   0xd   :  { %p72_p7 = pnand %p71_p6, %p65_p3 }
   0xf   :  { %75 = shalt.err (!%p72_p7)
}
  0x10   :  { %17 = dma.hbm_to_vmem [thread:$0]  %s138_s0, 256, %s15_s7, [#allocation3]  }
  0x11   :  { %98 = dma.done.wait [#allocation3], 256  }
  0x12   :  { %99 = vsyncadd [#allocation3], 4294967040  ;;  %v21_v0 = vld [vmem:[#allocation2] sm:$0xff]  ;;  %v22_v1 = vld [vmem:[#allocation2 + $0x8] sm:$0xff]  ;;  %s103_s18 = smov [#allocation5]  }
  0x13   :  { %v23_v2 = vmul.f32 4.0, %v21_v0  ;;  %v24_v3 = vmul.f32 4.0, %v22_v1  ;;  %s43_s19 = sshll.u32 %s103_s18, 4  ;;  %s44_s19 = int_to_ptr.vmem [resolvable:$true] %s43_s19 }
  0x14   :  { %s76_s0 = scalar_lea.vmem %s44_s19, 256  ;;  %p81_p9 = scmp.lt.s32.totalorder %s44_s19, %s44_s19 }
  0x15   :  { %v25_v4 = vmax.f32 %v23_v2, 0.0  ;;  %v26_v5 = vmax.f32 %v24_v3, 0.0  ;;  %p77_p8 = scmp.ne.s32.totalorder %s44_s19, %s76_s0  ;;  %p82_p10 = scmp.lt.s32.totalorder %s76_s0, %s76_s0 }
  0x17   :  { %v27_v6 = vmin.f32 %v25_v4, 4.0  ;;  %v28_v7 = vmin.f32 %v26_v5, 4.0  ;;  %p83_p11 = por %p82_p10, %p81_p9 }
  0x19   :  { %v29_v8 = vadd.f32 0.5, %v27_v6  ;;  %v30_v9 = vadd.f32 0.5, %v28_v7  ;;  %p84_p12 = pnand %p83_p11, %p77_p8 }
  0x1b   :  { %v31_v10 = vfloor.f32 %v29_v8  ;;  %v32_v11 = vfloor.f32 %v30_v9 }
  0x1d   :  { %v33_v12 = vmul.f32 0.5, %v31_v10  ;;  %v34_v13 = vmul.f32 0.5, %v32_v11 }
  0x1f   :  { %35 = vst [vmem:[#allocation5] sm:$0xff] %v33_v12  ;;  %36 = vst [vmem:[#allocation5 + $0x8] sm:$0xff] %v34_v13 }
  0x20   :  { %87 = shalt.err (!%p84_p12)
}
  0x21   :  { %s88_s22 = scalar_lea.hbm %s139_s1, 256 }
  0x22   :  { %p89_p13 = scmp.ne.s32.totalorder %s139_s1, %s88_s22  ;;  %p92_p0 = scmp.lt.u32.totalorder %s88_s22, %s139_s1 }
  0x24   :  { %p94_p1 = pnand %p92_p0, %p89_p13 }
  0x26   :  { %97 = shalt.err (!%p94_p1)
}
  0x27   :  { %46 = dma.vmem_to_hbm [thread:$0]  %s44_s19, 256, %s139_s1, [#allocation4]  }
  0x28   :  { %100 = dma.done.wait [#allocation4], 256  }
  0x29   :  { %101 = vsyncadd [#allocation4], 4294967040 }
  0x2a   :  { %50 = vsyncpa [#allocation3], 1 }
  0x2b   :  { %51 = vsyncpa [#allocation4], 1 }

</bundles_post_ra>
